<compile_context>
chip_gen: v7x
topology: tpu7x:2x2x1
jax: 0.10.0
libtpu: 0.0.40
codegen_flags: <defaults>
</compile_context>

<pallas_src>
import functools

import jax
import jax.numpy as jnp
import numpy as np
from jax import lax
from jax.experimental import pallas as pl
from jax.experimental.pallas import tpu as pltpu

KSIZE = 8
PAD = (KSIZE - 1) // 2  # = 3

# 1-D bicubic kernel; the module's BICUBIC_K table == outer(K1D, K1D)
# (exact in binary, up to two decimally-truncated entries in the table).
K1D = np.array(
    [-0.01171875, -0.03515625, 0.11328125, 0.43359375,
     0.43359375, 0.11328125, -0.03515625, -0.01171875],
    dtype=np.float64,
)

# 2-D table exactly as written in the PyTorch module (used by the JAX reference).
BICUBIC_K = [
    [0.0001373291015625, 0.0004119873046875, -0.0013275146484375, -0.0050811767578125,
     -0.0050811767578125, -0.0013275146484375, 0.0004119873046875, 0.0001373291015625],
    [0.0004119873046875, 0.0012359619140625, -0.0039825439453125, -0.0152435302734375,
     -0.0152435302734375, -0.0039825439453125, 0.0012359619140625, 0.0004119873046875],
    [-0.0013275146484375, -0.003982543945313, 0.0128326416015625, 0.0491180419921875,
     0.0491180419921875, 0.0128326416015625, -0.0039825439453125, -0.0013275146484375],
    [-0.0050811767578125, -0.0152435302734375, 0.0491180419921875, 0.188003540039063,
     0.188003540039063, 0.0491180419921875, -0.0152435302734375, -0.0050811767578125],
    [-0.0050811767578125, -0.0152435302734375, 0.0491180419921875, 0.188003540039063,
     0.188003540039063, 0.0491180419921875, -0.0152435302734375, -0.0050811767578125],
    [-0.001327514648438, -0.0039825439453125, 0.0128326416015625, 0.0491180419921875,
     0.0491180419921875, 0.0128326416015625, -0.0039825439453125, -0.0013275146484375],
    [0.0004119873046875, 0.0012359619140625, -0.0039825439453125, -0.0152435302734375,
     -0.0152435302734375, -0.0039825439453125, 0.0012359619140625, 0.0004119873046875],
    [0.0001373291015625, 0.0004119873046875, -0.0013275146484375, -0.0050811767578125,
     -0.0050811767578125, -0.0013275146484375, 0.0004119873046875, 0.0001373291015625],
]


def _band_matrix(in_dim, out_dim, stride, offset):
    """Banded conv matrix: m[idx, j] = K1D[t] with idx = stride*(j+offset)+t-PAD.

    Folds the conv stride, the zero padding (out-of-range taps simply omitted)
    and the shave_a2b crop offset into one dense (in_dim, out_dim) matrix,
    built at trace time (tiny).
    """
    m = np.zeros((in_dim, out_dim), dtype=np.float64)
    for j in range(out_dim):
        for t in range(KSIZE):
            idx = stride * (j + offset) + t - PAD
            if 0 <= idx < in_dim:
                m[idx, j] = K1D[t]
    return m


def _downscale_loss_kernel(wht_ref, ww_ref, x_ref, g_ref, out_ref, *, nb, n_total):
    """NB batch elements per grid step; writes one partial squared-error sum."""
    step = pl.program_id(0)

    hg, h = wht_ref.shape
    w, wg = ww_ref.shape

    # Widen after DMA (HBM traffic stays in the native dtype).
    # NOTE: for bf16 inputs on v6e/v7x one could keep the big operand in bf16
    # and cast the band matrices to bf16 (taps are exact in bf16); kept f32
    # here for robustness across generations.
    x = x_ref[...].astype(jnp.float32)            # (nb, C, H, W)
    xs = jnp.sum(x, axis=1)                       # channel sum: (nb, H, W)

    # Column-band matmul for the whole block at once on the MXU:
    #   (nb*H, W) @ (W, Wg)  — fills the MXU M dimension with nb*H.
    tmp = jnp.dot(xs.reshape(nb * h, w), ww_ref[...],
                  preferred_element_type=jnp.float32)           # (nb*H, Wg)
    tmp = tmp.reshape(nb, h, wg)

    g = g_ref[...].astype(jnp.float32)            # (nb, Cg, Hg, Wg)

    total = jnp.float32(0.0)
    # Static unroll over the (small, capped) batch block: row-band matmul +
    # direct residual MSE (no expanded-form cancellation).
    for b in range(nb):
        shaved_b = jnp.dot(wht_ref[...], tmp[b],
                           preferred_element_type=jnp.float32)  # (Hg, Wg)
        r_b = g[b] - shaved_b                     # (Cg, Hg, Wg), broadcast over Cg
        sq_b = jnp.sum(r_b * r_b)
        if n_total % nb != 0:
            # Tail masking: images past N contribute nothing (where on the
            # reduced scalar also discards any garbage/NaN from the padded
            # part of the overhanging block).
            sq_b = jnp.where(step * nb + b < n_total, sq_b, jnp.float32(0.0))
        total = total + sq_b

    out_ref[0, 0] = total


def downscale_loss_pallas(g_input, g_output, scale_factor=0.5):
    """Pallas implementation of DownScaleLoss.forward(g_input, g_output)."""
    N, C, H, W = g_input.shape
    Ng, Cg, Hg, Wg = g_output.shape
    assert N == Ng and C == Cg, "MSE requires g_output batch/channels to match g_input"

    s = int(round(1.0 / scale_factor))
    Ho = (H + 2 * PAD - KSIZE) // s + 1
    Wo = (W + 2 * PAD - KSIZE) // s + 1
    # shave_a2b only shrinks 'a'; if the conv output were smaller than g_output
    # the PyTorch module would fail in MSELoss anyway.
    assert Ho >= Hg and Wo >= Wg, "conv output smaller than g_output; shave_a2b undefined"
    r0 = (Ho - Hg) // 2
    c0 = (Wo - Wg) // 2

    w_cols = jnp.asarray(_band_matrix(W, Wg, s, c0), jnp.float32)      # (W, Wg)
    w_rows_t = jnp.asarray(_band_matrix(H, Hg, s, r0).T, jnp.float32)  # (Hg, H)

    # --- batch blocking: size NB so the double-buffered data blocks stay under
    # a v7x-safe budget; cap the static per-image unroll for compile time. ---
    in_item = jnp.dtype(g_input.dtype).itemsize
    out_item = jnp.dtype(g_output.dtype).itemsize
    per_image = C * H * W * in_item + Cg * Hg * Wg * out_item
    data_budget = 20 * 1024 * 1024                      # double-buffered data blocks
    nb = int(max(1, min(N, 64, data_budget // (2 * per_image))))
    num_steps = -(-N // nb)

    # Derive the scoped-VMEM cap from the actual footprint (blocks are
    # double-buffered by the pipeline) + f32 temporaries, clamped for v7x.
    block_bytes = nb * per_image
    band_bytes = (Hg * H + W * Wg) * 4
    tmp_bytes = nb * (C * H * W + H * W + H * Wg + (Cg + 2) * Hg * Wg) * 4
    vmem_limit = int(min(48 * 1024 * 1024,
                         max(32 * 1024 * 1024,
                             2 * block_bytes + 2 * band_bytes + tmp_bytes
                             + 4 * 1024 * 1024)))

    kernel = functools.partial(_downscale_loss_kernel, nb=nb, n_total=N)

    # TODO(synk): for very large images where a single (nb, C, H, W) block no
    # longer fits VMEM, add a second grid axis over row bands of H with a
    # VMEM accumulator for `shaved` (the row band matrix contracts over H).
    partials = pl.pallas_call(
        kernel,
        out_shape=jax.ShapeDtypeStruct((num_steps, 1), jnp.float32),
        grid=(num_steps,),
        in_specs=[
            pl.BlockSpec((Hg, H), lambda n: (0, 0)),                # row band matrix
            pl.BlockSpec((W, Wg), lambda n: (0, 0)),                # col band matrix
            pl.BlockSpec((nb, C, H, W), lambda n: (n, 0, 0, 0)),    # g_input block
            pl.BlockSpec((nb, Cg, Hg, Wg), lambda n: (n, 0, 0, 0)),  # g_output block
        ],
        out_specs=pl.BlockSpec((1, 1), lambda n: (n, 0),
                               memory_space=pltpu.MemorySpace.SMEM),
        compiler_params=pltpu.CompilerParams(
            # Per-step partials are independent -> parallel batch axis
            # (uses both TensorCores on v7x; neutral on v5e/v6e).
            dimension_semantics=("parallel",),
            vmem_limit_bytes=vmem_limit,
        ),
    )(w_rows_t, w_cols, g_input, g_output)

    return jnp.sum(partials) / jnp.float32(N * Cg * Hg * Wg)


def downscale_loss_ref(g_input, g_output, scale_factor=0.5):
    """Pure-JAX reference mirroring the PyTorch module (for verification)."""
    C = g_input.shape[1]
    k = jnp.array(BICUBIC_K, jnp.float32)
    w = jnp.broadcast_to(k, (C, C, KSIZE, KSIZE))
    s = int(round(1.0 / scale_factor))
    down = lax.conv_general_dilated(
        g_input.astype(jnp.float32), w,
        window_strides=(s, s), padding=[(PAD, PAD), (PAD, PAD)],
        dimension_numbers=("NCHW", "OIHW", "NCHW"),
    )
    Ho, Wo = down.shape[2], down.shape[3]
    Hg, Wg = g_output.shape[2], g_output.shape[3]
    sr, sc = max(0, Ho - Hg), max(0, Wo - Wg)
    shaved = down[:, :, sr // 2:Ho - sr // 2 - sr % 2, sc // 2:Wo - sc // 2 - sc % 2]
    return jnp.mean((g_output.astype(jnp.float32) - shaved) ** 2)


if __name__ == "__main__":
    key = jax.random.PRNGKey(0)
    k1, k2 = jax.random.split(key)

    scale_factor = 0.5
    # g_input: generator HR input; g_output: generator's downscaled output.
    g_input = jax.random.normal(k1, (2, 4, 16, 16), dtype=jnp.float32)
    # Bicubic downscale of a 16x16 input is 8x8; a 6x6 g_output exercises shave_a2b.
    g_output = jax.random.normal(k2, (2, 4, 6, 6), dtype=jnp.float32)

    loss = downscale_loss_pallas(g_input, g_output, scale_factor)
    loss = jax.block_until_ready(loss)

    loss_ref = jax.block_until_ready(downscale_loss_ref(g_input, g_output, scale_factor))
    assert jnp.allclose(loss, loss_ref, rtol=1e-4, atol=1e-5), (loss, loss_ref)

    print("KERNEL_OK")
</pallas_src>

<mosaic_0001>
module attributes {stable_mosaic.version = 11 : i64} {
  func.func @_downscale_loss_kernel(%arg0: i32, %arg1: memref<6x16xf32, #tpu.memory_space<vmem>>, %arg2: memref<16x6xf32, #tpu.memory_space<vmem>>, %arg3: memref<2x4x16x16xf32, #tpu.memory_space<vmem>>, %arg4: memref<2x4x6x6xf32, #tpu.memory_space<vmem>>, %arg5: memref<1x1xf32, #tpu.memory_space<smem>>) attributes {dimension_semantics = [#tpu.dimension_semantics<parallel>], iteration_bounds = array<i64: 1>, scalar_prefetch = 0 : i64, scratch_operands = 0 : i64, tpu.core_type = #tpu.core_type<tc>, window_params = [{pipeline_mode = #tpu.pipeline_mode<synchronous>, transform_indices = @transform_0, window_bounds = array<i64: 6, 16>}, {pipeline_mode = #tpu.pipeline_mode<synchronous>, transform_indices = @transform_1, window_bounds = array<i64: 16, 6>}, {transform_indices = @transform_2, window_bounds = array<i64: 2, 4, 16, 16>}, {transform_indices = @transform_3, window_bounds = array<i64: 2, 4, 6, 6>}, {transform_indices = @transform_4, window_bounds = array<i64: 1, 1>}]} {
    %c0 = arith.constant 0 : index
    %c0_0 = arith.constant 0 : index
    %c0_1 = arith.constant 0 : index
    %c0_2 = arith.constant 0 : index
    %0 = vector.load %arg3[%c0, %c0_0, %c0_1, %c0_2] : memref<2x4x16x16xf32, #tpu.memory_space<vmem>>, vector<2x4x16x16xf32>
    %cst = arith.constant dense<0.000000e+00> : vector<2x16x16xf32>
    %1 = vector.multi_reduction <add>, %0, %cst [1] : vector<2x4x16x16xf32> to vector<2x16x16xf32>
    %2 = vector.shape_cast %1 : vector<2x16x16xf32> to vector<32x16xf32>
    %c0_3 = arith.constant 0 : index
    %c0_4 = arith.constant 0 : index
    %3 = vector.load %arg2[%c0_3, %c0_4] : memref<16x6xf32, #tpu.memory_space<vmem>>, vector<16x6xf32>
    %cst_5 = arith.constant dense<0.000000e+00> : vector<32x6xf32>
    %4 = tpu.matmul %2, %3, %cst_5 {dimension_numbers = #tpu.dot_dimension_numbers<[1], [0], [0], [1], [0, 0, 1, 1], [], []>} : vector<32x16xf32>, vector<16x6xf32>, vector<32x6xf32> -> vector<32x6xf32>
    %5 = vector.shape_cast %4 : vector<32x6xf32> to vector<2x16x6xf32>
    %c0_6 = arith.constant 0 : index
    %c0_7 = arith.constant 0 : index
    %c0_8 = arith.constant 0 : index
    %c0_9 = arith.constant 0 : index
    %6 = vector.load %arg4[%c0_6, %c0_7, %c0_8, %c0_9] : memref<2x4x6x6xf32, #tpu.memory_space<vmem>>, vector<2x4x6x6xf32>
    %c0_10 = arith.constant 0 : index
    %c0_11 = arith.constant 0 : index
    %7 = vector.load %arg1[%c0_10, %c0_11] : memref<6x16xf32, #tpu.memory_space<vmem>>, vector<6x16xf32>
    %8 = vector.extract_strided_slice %5 {offsets = [0, 0, 0], sizes = [1, 16, 6], strides = [1, 1, 1]} : vector<2x16x6xf32> to vector<1x16x6xf32>
    %9 = vector.shape_cast %8 : vector<1x16x6xf32> to vector<16x6xf32>
    %cst_12 = arith.constant dense<0.000000e+00> : vector<6x6xf32>
    %10 = tpu.matmul %7, %9, %cst_12 {dimension_numbers = #tpu.dot_dimension_numbers<[1], [0], [0], [1], [0, 0, 1, 1], [], []>} : vector<6x16xf32>, vector<16x6xf32>, vector<6x6xf32> -> vector<6x6xf32>
    %11 = vector.extract_strided_slice %6 {offsets = [0, 0, 0, 0], sizes = [1, 4, 6, 6], strides = [1, 1, 1, 1]} : vector<2x4x6x6xf32> to vector<1x4x6x6xf32>
    %12 = vector.shape_cast %11 : vector<1x4x6x6xf32> to vector<4x6x6xf32>
    %13 = vector.shape_cast %10 : vector<6x6xf32> to vector<1x6x6xf32>
    %14 = vector.broadcast %13 : vector<1x6x6xf32> to vector<4x6x6xf32>
    %15 = arith.subf %12, %14 : vector<4x6x6xf32>
    %16 = arith.mulf %15, %15 : vector<4x6x6xf32>
    %17 = vector.shape_cast %16 : vector<4x6x6xf32> to vector<1x4x6x6xf32>
    %cst_13 = arith.constant dense<0.000000e+00> : vector<1xf32>
    %18 = vector.multi_reduction <add>, %17, %cst_13 [1, 2, 3] : vector<1x4x6x6xf32> to vector<1xf32>
    %19 = vector.shape_cast %18 : vector<1xf32> to vector<1x1x1x1xf32>
    %20 = vector.extract %19[0, 0, 0, 0] : f32 from vector<1x1x1x1xf32>
    %cst_14 = arith.constant 0.000000e+00 : f32
    %21 = arith.addf %cst_14, %20 : f32
    %c0_15 = arith.constant 0 : index
    %c0_16 = arith.constant 0 : index
    %22 = vector.load %arg1[%c0_15, %c0_16] : memref<6x16xf32, #tpu.memory_space<vmem>>, vector<6x16xf32>
    %23 = vector.extract_strided_slice %5 {offsets = [1, 0, 0], sizes = [1, 16, 6], strides = [1, 1, 1]} : vector<2x16x6xf32> to vector<1x16x6xf32>
    %24 = vector.shape_cast %23 : vector<1x16x6xf32> to vector<16x6xf32>
    %cst_17 = arith.constant dense<0.000000e+00> : vector<6x6xf32>
    %25 = tpu.matmul %22, %24, %cst_17 {dimension_numbers = #tpu.dot_dimension_numbers<[1], [0], [0], [1], [0, 0, 1, 1], [], []>} : vector<6x16xf32>, vector<16x6xf32>, vector<6x6xf32> -> vector<6x6xf32>
    %26 = vector.extract_strided_slice %6 {offsets = [1, 0, 0, 0], sizes = [1, 4, 6, 6], strides = [1, 1, 1, 1]} : vector<2x4x6x6xf32> to vector<1x4x6x6xf32>
    %27 = vector.shape_cast %26 : vector<1x4x6x6xf32> to vector<4x6x6xf32>
    %28 = vector.shape_cast %25 : vector<6x6xf32> to vector<1x6x6xf32>
    %29 = vector.broadcast %28 : vector<1x6x6xf32> to vector<4x6x6xf32>
    %30 = arith.subf %27, %29 : vector<4x6x6xf32>
    %31 = arith.mulf %30, %30 : vector<4x6x6xf32>
    %32 = vector.shape_cast %31 : vector<4x6x6xf32> to vector<1x4x6x6xf32>
    %cst_18 = arith.constant dense<0.000000e+00> : vector<1xf32>
    %33 = vector.multi_reduction <add>, %32, %cst_18 [1, 2, 3] : vector<1x4x6x6xf32> to vector<1xf32>
    %34 = vector.shape_cast %33 : vector<1xf32> to vector<1x1x1x1xf32>
    %35 = vector.extract %34[0, 0, 0, 0] : f32 from vector<1x1x1x1xf32>
    %36 = arith.addf %21, %35 : f32
    %c0_19 = arith.constant 0 : index
    %c0_20 = arith.constant 0 : index
    %37 = memref.load %arg5[%c0_19, %c0_20] : memref<1x1xf32, #tpu.memory_space<smem>>
    memref.store %36, %arg5[%c0_19, %c0_20] : memref<1x1xf32, #tpu.memory_space<smem>>
    return
  }
  func.func @transform_0(%arg0: i32) -> (i32, i32) {
    %c0_i32 = arith.constant 0 : i32
    %c0_i32_0 = arith.constant 0 : i32
    %c0_i32_1 = arith.constant 0 : i32
    return %c0_i32, %c0_i32_0 : i32, i32
  }
  func.func @transform_1(%arg0: i32) -> (i32, i32) {
    %c0_i32 = arith.constant 0 : i32
    %c0_i32_0 = arith.constant 0 : i32
    %c0_i32_1 = arith.constant 0 : i32
    return %c0_i32, %c0_i32_0 : i32, i32
  }
  func.func @transform_2(%arg0: i32) -> (i32, i32, i32, i32) {
    %c0_i32 = arith.constant 0 : i32
    %c0_i32_0 = arith.constant 0 : i32
    %c0_i32_1 = arith.constant 0 : i32
    %c0_i32_2 = arith.constant 0 : i32
    return %arg0, %c0_i32, %c0_i32_0, %c0_i32_1 : i32, i32, i32, i32
  }
  func.func @transform_3(%arg0: i32) -> (i32, i32, i32, i32) {
    %c0_i32 = arith.constant 0 : i32
    %c0_i32_0 = arith.constant 0 : i32
    %c0_i32_1 = arith.constant 0 : i32
    %c0_i32_2 = arith.constant 0 : i32
    return %arg0, %c0_i32, %c0_i32_0, %c0_i32_1 : i32, i32, i32, i32
  }
  func.func @transform_4(%arg0: i32) -> (i32, i32) {
    %c0_i32 = arith.constant 0 : i32
    %c0_i32_0 = arith.constant 0 : i32
    return %arg0, %c0_i32 : i32, i32
  }
}

</mosaic_0001>

<bundles_post_ra>
// kernel: tpu_custom_call.1
= control target key start
LH: loop header
LB: loop body
LE: loop exit
PB: predicated region body
PF: predicated region fallthrough
CT: control target
= control target key end

     0   :  { %vm34_vm0 = vcmask 130048   ;;  %s604_s0 = inlined_call_operand.vmem [shape: f32[6,16], index: 0, kind: input, shape index: {}]   ;;  %s605_s1 = inlined_call_operand.vmem [shape: f32[16,6], index: 1, kind: input, shape index: {}]   ;;  %s606_s2 = inlined_call_operand.vmem [shape: f32[2,4,16,16], index: 2, kind: input, shape index: {}]   ;;  %s607_s3 = inlined_call_operand.vmem [shape: f32[2,4,6,6], index: 3, kind: input, shape index: {}]   ;;  %s608_s4 = inlined_call_operand.hbm [shape: f32[1,1], index: 4, kind: output, shape index: {}]  }
   0x1   :  { %v63_v0 = vld [vmem:[%s605_s1] sm:$0xff]  ;;  %v64_v1 = vld [vmem:[%s605_s1 + $0x8] sm:$0xff]  ;;  %v20_v4 = vld [vmem:[%s606_s2 + $0x10] sm:$0xff] }
   0x2   :  { %v18_v2 = vld [vmem:[%s606_s2] sm:$0xff]  ;;  %v422_v3 = vpack.c.bf16 %v64_v1, %v63_v0  ;;  %v24_v6 = vld [vmem:[%s606_s2 + $0x30] sm:$0xff]  ;;  %v36_v8 = vsel %vm34_vm0, %v20_v4, 0.0  ;;  %v19_v11 = vld [vmem:[%s606_s2 + $0x8] sm:$0xff] }
   0x3   :  { %v22_v5 = vld [vmem:[%s606_s2 + $0x20] sm:$0xff]  ;;  %v35_v7 = vsel %vm34_vm0, %v18_v2, 0.0  ;;  %v40_v10 = vsel %vm34_vm0, %v24_v6, 0.0  ;;  %v21_v12 = vld [vmem:[%s606_s2 + $0x18] sm:$0xff]  ;;  %v23_v13 = vld [vmem:[%s606_s2 + $0x28] sm:$0xff]  ;;  %v42_v16 = vsel %vm34_vm0, %v19_v11, 0.0 }
   0x4   :  { %v38_v9 = vsel %vm34_vm0, %v22_v5, 0.0  ;;  %423 = vmatprep.subr.bf16.mxu0 %v422_v3  ;;  %v37_v14 = vadd.f32 %v36_v8, %v35_v7  ;;  %v25_v15 = vld [vmem:[%s606_s2 + $0x38] sm:$0xff]  ;;  %v43_v17 = vsel %vm34_vm0, %v21_v12, 0.0  ;;  %v45_v18 = vsel %vm34_vm0, %v23_v13, 0.0  ;;  %v26_v19 = vld [vmem:[%s606_s2 + $0x40] sm:$0xff]  ;;  %v28_v20 = vld [vmem:[%s606_s2 + $0x50] sm:$0xff] }
   0x5   :  { %425 = vmatpush3.bf16.msra.mxu0 %v422_v3  ;;  %v44_v21 = vadd.f32 %v43_v17, %v42_v16  ;;  %v47_v22 = vsel %vm34_vm0, %v25_v15, 0.0  ;;  %v30_v23 = vld [vmem:[%s606_s2 + $0x60] sm:$0xff]  ;;  %v32_v24 = vld [vmem:[%s606_s2 + $0x70] sm:$0xff]  ;;  %v49_v25 = vsel %vm34_vm0, %v26_v19, 0.0  ;;  %v50_v26 = vsel %vm34_vm0, %v28_v20, 0.0  ;;  %v27_v27 = vld [vmem:[%s606_s2 + $0x48] sm:$0xff] }
   0x6   :  { %v39_v28 = vadd.f32 %v38_v9, %v37_v14  ;;  %v51_v29 = vadd.f32 %v50_v26, %v49_v25  ;;  %v52_v30 = vsel %vm34_vm0, %v30_v23, 0.0  ;;  %v54_v31 = vsel %vm34_vm0, %v32_v24, 0.0  ;;  %v29_v32 = vld [vmem:[%s606_s2 + $0x58] sm:$0xff]  ;;  %v31_v33 = vld [vmem:[%s606_s2 + $0x68] sm:$0xff] }
   0x7   :  { %v33_v34 = vld [vmem:[%s606_s2 + $0x78] sm:$0xff]  ;;  %v46_v35 = vadd.f32 %v45_v18, %v44_v21  ;;  %v56_v36 = vsel %vm34_vm0, %v27_v27, 0.0  ;;  %v57_v37 = vsel %vm34_vm0, %v29_v32, 0.0  ;;  %v59_v38 = vsel %vm34_vm0, %v31_v33, 0.0 }
   0x8   :  { %9 = vsyncpa [#allocation3], 0  ;;  %v41_v39 = vadd.f32 %v40_v10, %v39_v28  ;;  %v53_v40 = vadd.f32 %v52_v30, %v51_v29  ;;  %v58_v41 = vadd.f32 %v57_v37, %v56_v36  ;;  %v61_v43 = vsel %vm34_vm0, %v33_v34, 0.0  ;;  %v170_v53 = vld [vmem:[%s604_s0] sm:$0x3f]  ;;  %s440_s17 = scalar_lea.hbm %s608_s4, 16 }
   0x9   :  { %v48_v42 = vadd.f32 %v47_v22, %v46_v35  ;;  %v452_v47 = vmov 0.0|0.0   ;;  %vm453_vm1 = vmmov 0   ;;  %v454_v48 = vmov 0.0   ;;  %v162_v56 = vld [vmem:[%s607_s3] sm:$0x3f]  ;;  %p441_p0 = scmp.ne.s32.totalorder %s608_s4, %s440_s17  ;;  %p444_p1 = scmp.lt.u32.totalorder %s440_s17, %s608_s4 }
   0xa   :  { %402 = vmatprep.mubr.msk.f32.mxu0 %vm34_vm0, %v41_v39  ;;  %v55_v44 = vadd.f32 %v54_v31, %v53_v40  ;;  %v60_v45 = vadd.f32 %v59_v38, %v58_v41  ;;  %426 = vmatprep.subr.bf16.mxu1 %v452_v47  ;;  %v163_v57 = vld [vmem:[%s607_s3 + $0x8] sm:$0x3f]  ;;  %v164_v58 = vld [vmem:[%s607_s3 + $0x10] sm:$0x3f]  ;;  %v165_v59 = vld [vmem:[%s607_s3 + $0x18] sm:$0x3f] }
   0xb   :  { %403 = vmatmul.mubr.msk.f32.vlgmr.msra.gmra.mrb[0].mxu0 %vm34_vm0, %v48_v42  ;;  %412 = vmatprep.mubr.msk.f32.mxu1 %vm453_vm1, %v454_v48  ;;  %v166_v0 = vld [vmem:[%s607_s3 + $0x20] sm:$0x3f]  ;;  %v167_v2 = vld [vmem:[%s607_s3 + $0x28] sm:$0x3f]  ;;  %v168_v3 = vld [vmem:[%s607_s3 + $0x30] sm:$0x3f]  ;;  %p446_p2 = pnand %p444_p1, %p441_p0 }
   0xc   :  { %405 = vmatprep.mubr.msk.f32.mxu0 %vm34_vm0, %v55_v44  ;;  %v62_v46 = vadd.f32 %v61_v43, %v60_v45  ;;  %vm252_vm2 = vcmask 46080   ;;  %v169_v7 = vld [vmem:[%s607_s3 + $0x38] sm:$0x3f] }
   0xf   :  { %406 = vmatmul.mubr.msk.f32.gmra.mrb[2].mxu0 %vm34_vm0, %v62_v46 }
  0xde   :  { %v404_v49 = vpop.f32.mrb[0].mxu0 }
  0xdf   :  { %v143_v50 = vpop.f32.mrb[1].mxu0 }
  0xe0   :  { %v427_v51 = vpack.c.bf16 %v404_v49, %v143_v50 }
  0xe2   :  { %v407_v52 = vpop.f32.mrb[2].mxu0  ;;  %428 = vmatpush3.bf16.msra.mxu1 %v427_v51 }
  0xe3   :  { %v153_v54 = vpop.f32.mrb[3].mxu0  ;;  %429 = vmatprep.subr.bf16.mxu1 %v452_v47 }
  0xe4   :  { %v430_v55 = vpack.c.bf16 %v407_v52, %v153_v54 }
  0xe5   :  { %413 = vmatmul.mubr.msk.f32.vlgmr.msra.gmra.mrb[0].mxu1 %vm34_vm0, %v170_v53 }
  0xe6   :  { %431 = vmatpush3.bf16.msra.mxu1 %v430_v55  ;;  %419 = vmatprep.mubr.msk.f32.mxu1 %vm453_vm1, %v454_v48 }
  0xe9   :  { %420 = vmatmul.mubr.msk.f32.vlgmr.msra.gmra.mrb[2].mxu1 %vm34_vm0, %v170_v53 }
 0x1b8   :  { %v240_v60 = vpop.f32.mrb[0].mxu1 }
 0x1b9   :  { %v244_v61 = vsub.f32 %v162_v56, %v240_v60  ;;  %v245_v62 = vsub.f32 %v163_v57, %v240_v60  ;;  %v414_v63 = vpop.f32.mrb[1].mxu1  ;;  %v246_v1 = vsub.f32 %v164_v58, %v240_v60  ;;  %v247_v4 = vsub.f32 %v165_v59, %v240_v60 }
 0x1bb   :  { %v248_v5 = vmul.f32 %v244_v61, %v244_v61  ;;  %v249_v6 = vmul.f32 %v245_v62, %v245_v62  ;;  %v250_v9 = vmul.f32 %v246_v1, %v246_v1  ;;  %v251_v15 = vmul.f32 %v247_v4, %v247_v4 }
 0x1bc   :  { %v336_v8 = vpop.f32.mrb[2].mxu1 }
 0x1bd   :  { %v340_v10 = vsub.f32 %v166_v0, %v336_v8  ;;  %v341_v11 = vsub.f32 %v167_v2, %v336_v8  ;;  %v342_v12 = vsub.f32 %v168_v3, %v336_v8  ;;  %v421_v13 = vpop.f32.mrb[3].mxu1  ;;  %v253_v14 = vsel %vm252_vm2, %v248_v5, 0.0 }
 0x1be   :  { %v254_v16 = vsel %vm252_vm2, %v249_v6, 0.0  ;;  %v343_v17 = vsub.f32 %v169_v7, %v336_v8  ;;  %v256_v22 = vsel %vm252_vm2, %v250_v9, 0.0  ;;  %v258_v27 = vsel %vm252_vm2, %v251_v15, 0.0 }
 0x1bf   :  { %v344_v18 = vmul.f32 %v340_v10, %v340_v10  ;;  %v345_v19 = vmul.f32 %v341_v11, %v341_v11  ;;  %v346_v20 = vmul.f32 %v342_v12, %v342_v12  ;;  %v255_v21 = vadd.f32 %v254_v16, %v253_v14 }
 0x1c0   :  { %v347_v24 = vmul.f32 %v343_v17, %v343_v17 }
 0x1c1   :  { %v257_v23 = vadd.f32 %v256_v22, %v255_v21  ;;  %v348_v25 = vsel %vm252_vm2, %v344_v18, 0.0  ;;  %v349_v26 = vsel %vm252_vm2, %v345_v19, 0.0  ;;  %v351_v30 = vsel %vm252_vm2, %v346_v20, 0.0 }
 0x1c2   :  { %v350_v28 = vadd.f32 %v349_v26, %v348_v25  ;;  %v353_v32 = vsel %vm252_vm2, %v347_v24, 0.0 }
 0x1c3   :  { %v259_v29 = vadd.f32 %v258_v27, %v257_v23 }
 0x1c4   :  { %v352_v31 = vadd.f32 %v351_v30, %v350_v28 }
 0x1c5   :  { %260 = vadd.xlane.f32.xlu0 %v259_v29 }
 0x1c6   :  { %v354_v33 = vadd.f32 %v353_v32, %v352_v31 }
 0x1c9   :  { %355 = vadd.xlane.f32.xlu0 %v354_v33 }
 0x252   :  { %v261_v34 = vpop.xlane.xlu0 %260 }
 0x253   :  { %v262_v35 = vrot.slane %v261_v34, 4 }
 0x255   :  { %v263_v36 = vadd.f32 %v262_v35, %v261_v34 }
 0x256   :  { %v356_v37 = vpop.xlane.xlu0 %355 }
 0x257   :  { %v264_v38 = vrot.slane %v263_v36, 2  ;;  %v357_v39 = vrot.slane %v356_v37, 4 }
 0x259   :  { %v358_v40 = vadd.f32 %v357_v39, %v356_v37  ;;  %v265_v41 = vadd.f32 %v264_v38, %v263_v36 }
 0x25b   :  { %v359_v42 = vrot.slane %v358_v40, 2  ;;  %v266_v43 = vrot.slane %v265_v41, 1 }
 0x25d   :  { %v360_v44 = vadd.f32 %v359_v42, %v358_v40  ;;  %v267_v45 = vadd.f32 %v266_v43, %v265_v41 }
 0x25f   :  { %432 = vpush %v267_v45  ;;  %v361_v46 = vrot.slane %v360_v44, 1 }
 0x261   :  { %v362_v47 = vadd.f32 %v361_v46, %v360_v44 }
 0x263   :  { %434 = vpush %v362_v47 }
 0x290   :  { %s433_s3 = spop %432 }
 0x294   :  { %s435_s13 = spop %434 }
 0x295   :  { %s364_s14 = sadd.f32 %s435_s13, %s433_s3 }
 0x297   :  { %366 = sst [smem:[#allocation2]] %s364_s14 }
 0x298   :  { %449 = shalt.err (!%p446_p2)
}
 0x299   :  { %s455_s22 = smov [#allocation2]  }
 0x29a   :  { %374 = dma.smem_to_hbm %s455_s22, 16, %s608_s4, [#allocation3]  }
 0x29b   :  { %450 = dma.done.wait [#allocation3], 16  }
 0x29c   :  { %451 = vsyncadd [#allocation3], 4294967280 }
 0x29d   :  { %378 = sfence }
 0x29e   :  { %379 = vsyncpa [#allocation3], 1 }

</bundles_post_ra>
